<compile_context>
chip_gen: v6e
topology: v6e:2x2x1
jax: 0.10.0
libtpu: 0.0.40
codegen_flags: <defaults>
</compile_context>

<pallas_src>
import functools
import math

import jax
import jax.numpy as jnp
from jax.experimental import pallas as pl
from jax.experimental.pallas import tpu as pltpu

IN_DIM = 28 * 28            # 784
H1, H1_PAD = 500, 512       # hidden-1, padded to a multiple of 128 lanes
H2 = 256
OUT, OUT_PAD = 10, 128      # logits, padded to one full lane group


def _mlp_kernel(x_ref, w1_ref, b1_ref, w2_ref, b2_ref, w3_ref, b3_ref, o_ref):
    # x tile: (TM, 784) bf16; weights resident in VMEM (bf16); biases f32.
    # All three matmuls accumulate in f32 on the MXU; ReLUs/bias adds run on the VPU in f32.
    x = x_ref[...]
    h1 = jnp.dot(x, w1_ref[...], preferred_element_type=jnp.float32)
    h1 = jnp.maximum(h1 + b1_ref[...], 0.0)                       # (TM, 512) f32
    h2 = jnp.dot(h1.astype(jnp.bfloat16), w2_ref[...],
                 preferred_element_type=jnp.float32)
    h2 = jnp.maximum(h2 + b2_ref[...], 0.0)                       # (TM, 256) f32
    h3 = jnp.dot(h2.astype(jnp.bfloat16), w3_ref[...],
                 preferred_element_type=jnp.float32)
    o_ref[...] = (h3 + b3_ref[...]).astype(o_ref.dtype)           # (TM, 128) lane-dense store


def _round_up(x, m):
    return (x + m - 1) // m * m


def _prepare_params(params):
    """Zero-pad (500->512 hidden, 10->128 out) and cast weights to bf16 (biases stay f32).

    Padded b1 entries are 0 and padded w2 rows are 0, so ReLU(0) * 0 contributes nothing:
    the math is unchanged vs. the unpadded f32 model (up to bf16 weight/input rounding).
    """
    w1, b1, w2, b2, w3, b3 = params
    w1p = jnp.zeros((IN_DIM, H1_PAD), jnp.bfloat16).at[:, :H1].set(w1.astype(jnp.bfloat16))
    b1p = jnp.zeros((1, H1_PAD), jnp.float32).at[:, :H1].set(b1.astype(jnp.float32))
    w2p = jnp.zeros((H1_PAD, H2), jnp.bfloat16).at[:H1, :].set(w2.astype(jnp.bfloat16))
    b2p = b2.astype(jnp.float32)
    w3p = jnp.zeros((H2, OUT_PAD), jnp.bfloat16).at[:, :OUT].set(w3.astype(jnp.bfloat16))
    b3p = jnp.zeros((1, OUT_PAD), jnp.float32).at[:, :OUT].set(b3.astype(jnp.float32))
    return w1p, b1p, w2p, b2p, w3p, b3p


@functools.partial(jax.jit, static_argnames=("tm",))
def mlp_forward(x, params, tm=256):
    """x: (B, 1, 28, 28) or (B, 784). Returns (B, 10) f32 logits."""
    w1, b1, w2, b2, w3, b3 = _prepare_params(params)

    B = x.shape[0]
    x2d = x.reshape(B, IN_DIM).astype(jnp.bfloat16)   # same as torch x.view(-1, 784)

    # Batch tile: multiples of 256 fill the v6e/v7x 256x256 MXU (also fine for v5e's
    # 128x128); shrink for tiny batches so we don't pad B=2 up to 256 rows.
    tm = min(tm, _round_up(B, 8))
    b_pad = _round_up(B, tm)
    if b_pad != B:
        x2d = jnp.pad(x2d, ((0, b_pad - B), (0, 0)))

    resident = lambda i: (0, 0)   # weights/biases stay in VMEM across all grid steps

    out = pl.pallas_call(
        _mlp_kernel,
        out_shape=jax.ShapeDtypeStruct((b_pad, OUT_PAD), jnp.float32),
        grid_spec=pltpu.PrefetchScalarGridSpec(
            num_scalar_prefetch=0,
            grid=(b_pad // tm,),
            in_specs=[
                pl.BlockSpec((tm, IN_DIM), lambda i: (i, 0)),     # x tile, double-buffered
                pl.BlockSpec((IN_DIM, H1_PAD), resident),         # w1 (bf16, ~0.8 MB)
                pl.BlockSpec((1, H1_PAD), resident),              # b1
                pl.BlockSpec((H1_PAD, H2), resident),             # w2
                pl.BlockSpec((1, H2), resident),                  # b2
                pl.BlockSpec((H2, OUT_PAD), resident),            # w3
                pl.BlockSpec((1, OUT_PAD), resident),             # b3
            ],
            out_specs=pl.BlockSpec((tm, OUT_PAD), lambda i: (i, 0)),
        ),
        compiler_params=pltpu.CompilerParams(
            # Batch axis is independent -> megacore / dual-TC (v7x) sharding.
            dimension_semantics=("parallel",),
        ),
    )(x2d, w1, b1, w2, b2, w3, b3)

    return out[:B, :OUT]


def init_params(key):
    """Mirror torch.nn.Linear default init: W, b ~ U(-1/sqrt(fan_in), 1/sqrt(fan_in)).
    Weights returned as (in, out) so forward is x @ W + b (== torch x @ W.T + b)."""
    dims = [(IN_DIM, H1), (H1, H2), (H2, OUT)]
    params = []
    for fan_in, fan_out in dims:
        key, kw, kb = jax.random.split(key, 3)
        bound = 1.0 / math.sqrt(fan_in)
        w = jax.random.uniform(kw, (fan_in, fan_out), jnp.float32, -bound, bound)
        b = jax.random.uniform(kb, (1, fan_out), jnp.float32, -bound, bound)
        params.extend([w, b])
    return tuple(params)


def mlp_reference(x, params, compute_dtype=jnp.float32):
    """Pure-JAX reference. With compute_dtype=bf16 it matches the kernel's numerics
    (bf16 operands, f32 accumulation)."""
    w1, b1, w2, b2, w3, b3 = params
    x = x.reshape(x.shape[0], IN_DIM).astype(compute_dtype)
    h1 = jnp.dot(x, w1.astype(compute_dtype), preferred_element_type=jnp.float32) + b1
    h1 = jnp.maximum(h1, 0.0)
    h2 = jnp.dot(h1.astype(compute_dtype), w2.astype(compute_dtype),
                 preferred_element_type=jnp.float32) + b2
    h2 = jnp.maximum(h2, 0.0)
    return jnp.dot(h2.astype(compute_dtype), w3.astype(compute_dtype),
                   preferred_element_type=jnp.float32) + b3


if __name__ == "__main__":
    key = jax.random.PRNGKey(0)
    key, kx = jax.random.split(key)

    # Small MNIST-like batch: (B, C, H, W) = (2, 1, 28, 28)
    x = jax.random.normal(kx, (2, 1, 28, 28), jnp.float32)
    params = init_params(key)

    out = mlp_forward(x, params)
    out = jax.block_until_ready(out)
    assert out.shape == (2, OUT), out.shape

    # Compare against a reference with the same bf16-operand / f32-accumulate numerics.
    ref_bf16 = mlp_reference(x, params, compute_dtype=jnp.bfloat16)
    assert jnp.allclose(out, ref_bf16, atol=2e-2, rtol=2e-2), "mismatch vs bf16 reference"

    # Sanity check vs the full-f32 model (loose tolerance for bf16 weight rounding).
    ref_f32 = mlp_reference(x, params, compute_dtype=jnp.float32)
    assert jnp.allclose(out, ref_f32, atol=5e-2, rtol=5e-2), "mismatch vs f32 reference"

    print("KERNEL_OK")
</pallas_src>

<mosaic_0001>
module attributes {stable_mosaic.version = 11 : i64} {
  func.func @_mlp_kernel(%arg0: i32, %arg1: memref<8x784xbf16, #tpu.memory_space<vmem>>, %arg2: memref<784x512xbf16, #tpu.memory_space<vmem>>, %arg3: memref<1x512xf32, #tpu.memory_space<vmem>>, %arg4: memref<512x256xbf16, #tpu.memory_space<vmem>>, %arg5: memref<1x256xf32, #tpu.memory_space<vmem>>, %arg6: memref<256x128xbf16, #tpu.memory_space<vmem>>, %arg7: memref<1x128xf32, #tpu.memory_space<vmem>>, %arg8: memref<8x128xf32, #tpu.memory_space<vmem>>) attributes {dimension_semantics = [#tpu.dimension_semantics<parallel>], iteration_bounds = array<i64: 1>, scalar_prefetch = 0 : i64, scratch_operands = 0 : i64, tpu.core_type = #tpu.core_type<tc>, window_params = [{transform_indices = @transform_0, window_bounds = array<i64: 8, 784>}, {pipeline_mode = #tpu.pipeline_mode<synchronous>, transform_indices = @transform_1, window_bounds = array<i64: 784, 512>}, {pipeline_mode = #tpu.pipeline_mode<synchronous>, transform_indices = @transform_2, window_bounds = array<i64: 1, 512>}, {pipeline_mode = #tpu.pipeline_mode<synchronous>, transform_indices = @transform_3, window_bounds = array<i64: 512, 256>}, {pipeline_mode = #tpu.pipeline_mode<synchronous>, transform_indices = @transform_4, window_bounds = array<i64: 1, 256>}, {pipeline_mode = #tpu.pipeline_mode<synchronous>, transform_indices = @transform_5, window_bounds = array<i64: 256, 128>}, {pipeline_mode = #tpu.pipeline_mode<synchronous>, transform_indices = @transform_6, window_bounds = array<i64: 1, 128>}, {transform_indices = @transform_7, window_bounds = array<i64: 8, 128>}]} {
    %c0 = arith.constant 0 : index
    %c0_0 = arith.constant 0 : index
    %0 = vector.load %arg1[%c0, %c0_0] : memref<8x784xbf16, #tpu.memory_space<vmem>>, vector<8x784xbf16>
    %c0_1 = arith.constant 0 : index
    %c0_2 = arith.constant 0 : index
    %1 = vector.load %arg2[%c0_1, %c0_2] : memref<784x512xbf16, #tpu.memory_space<vmem>>, vector<784x512xbf16>
    %cst = arith.constant dense<0.000000e+00> : vector<8x512xf32>
    %2 = tpu.matmul %0, %1, %cst {dimension_numbers = #tpu.dot_dimension_numbers<[1], [0], [0], [1], [0, 0, 1, 1], [], []>} : vector<8x784xbf16>, vector<784x512xbf16>, vector<8x512xf32> -> vector<8x512xf32>
    %c0_3 = arith.constant 0 : index
    %c0_4 = arith.constant 0 : index
    %3 = vector.load %arg3[%c0_3, %c0_4] : memref<1x512xf32, #tpu.memory_space<vmem>>, vector<1x512xf32>
    %4 = vector.broadcast %3 : vector<1x512xf32> to vector<8x512xf32>
    %5 = arith.addf %2, %4 : vector<8x512xf32>
    %cst_5 = arith.constant 0.000000e+00 : f32
    %6 = vector.broadcast %cst_5 : f32 to vector<8x512xf32>
    %7 = arith.maximumf %5, %6 : vector<8x512xf32>
    %8 = arith.truncf %7 : vector<8x512xf32> to vector<8x512xbf16>
    %c0_6 = arith.constant 0 : index
    %c0_7 = arith.constant 0 : index
    %9 = vector.load %arg4[%c0_6, %c0_7] : memref<512x256xbf16, #tpu.memory_space<vmem>>, vector<512x256xbf16>
    %cst_8 = arith.constant dense<0.000000e+00> : vector<8x256xf32>
    %10 = tpu.matmul %8, %9, %cst_8 {dimension_numbers = #tpu.dot_dimension_numbers<[1], [0], [0], [1], [0, 0, 1, 1], [], []>} : vector<8x512xbf16>, vector<512x256xbf16>, vector<8x256xf32> -> vector<8x256xf32>
    %c0_9 = arith.constant 0 : index
    %c0_10 = arith.constant 0 : index
    %11 = vector.load %arg5[%c0_9, %c0_10] : memref<1x256xf32, #tpu.memory_space<vmem>>, vector<1x256xf32>
    %12 = vector.broadcast %11 : vector<1x256xf32> to vector<8x256xf32>
    %13 = arith.addf %10, %12 : vector<8x256xf32>
    %cst_11 = arith.constant 0.000000e+00 : f32
    %14 = vector.broadcast %cst_11 : f32 to vector<8x256xf32>
    %15 = arith.maximumf %13, %14 : vector<8x256xf32>
    %16 = arith.truncf %15 : vector<8x256xf32> to vector<8x256xbf16>
    %c0_12 = arith.constant 0 : index
    %c0_13 = arith.constant 0 : index
    %17 = vector.load %arg6[%c0_12, %c0_13] : memref<256x128xbf16, #tpu.memory_space<vmem>>, vector<256x128xbf16>
    %cst_14 = arith.constant dense<0.000000e+00> : vector<8x128xf32>
    %18 = tpu.matmul %16, %17, %cst_14 {dimension_numbers = #tpu.dot_dimension_numbers<[1], [0], [0], [1], [0, 0, 1, 1], [], []>} : vector<8x256xbf16>, vector<256x128xbf16>, vector<8x128xf32> -> vector<8x128xf32>
    %c0_15 = arith.constant 0 : index
    %c0_16 = arith.constant 0 : index
    %19 = vector.load %arg7[%c0_15, %c0_16] : memref<1x128xf32, #tpu.memory_space<vmem>>, vector<1x128xf32>
    %20 = vector.broadcast %19 : vector<1x128xf32> to vector<8x128xf32>
    %21 = arith.addf %18, %20 : vector<8x128xf32>
    %c0_17 = arith.constant 0 : index
    %c0_18 = arith.constant 0 : index
    %22 = vector.load %arg8[%c0_17, %c0_18] : memref<8x128xf32, #tpu.memory_space<vmem>>, vector<8x128xf32>
    tpu.vector_store %arg8[%c0_17, %c0_18], %21 {strides = array<i32>} : memref<8x128xf32, #tpu.memory_space<vmem>>, vector<8x128xf32>,
    return
  }
  func.func @transform_0(%arg0: i32) -> (i32, i32) {
    %c0_i32 = arith.constant 0 : i32
    %c0_i32_0 = arith.constant 0 : i32
    return %arg0, %c0_i32 : i32, i32
  }
  func.func @transform_1(%arg0: i32) -> (i32, i32) {
    %c0_i32 = arith.constant 0 : i32
    %c0_i32_0 = arith.constant 0 : i32
    %c0_i32_1 = arith.constant 0 : i32
    return %c0_i32, %c0_i32_0 : i32, i32
  }
  func.func @transform_2(%arg0: i32) -> (i32, i32) {
    %c0_i32 = arith.constant 0 : i32
    %c0_i32_0 = arith.constant 0 : i32
    %c0_i32_1 = arith.constant 0 : i32
    return %c0_i32, %c0_i32_0 : i32, i32
  }
  func.func @transform_3(%arg0: i32) -> (i32, i32) {
    %c0_i32 = arith.constant 0 : i32
    %c0_i32_0 = arith.constant 0 : i32
    %c0_i32_1 = arith.constant 0 : i32
    return %c0_i32, %c0_i32_0 : i32, i32
  }
  func.func @transform_4(%arg0: i32) -> (i32, i32) {
    %c0_i32 = arith.constant 0 : i32
    %c0_i32_0 = arith.constant 0 : i32
    %c0_i32_1 = arith.constant 0 : i32
    return %c0_i32, %c0_i32_0 : i32, i32
  }
  func.func @transform_5(%arg0: i32) -> (i32, i32) {
    %c0_i32 = arith.constant 0 : i32
    %c0_i32_0 = arith.constant 0 : i32
    %c0_i32_1 = arith.constant 0 : i32
    return %c0_i32, %c0_i32_0 : i32, i32
  }
  func.func @transform_6(%arg0: i32) -> (i32, i32) {
    %c0_i32 = arith.constant 0 : i32
    %c0_i32_0 = arith.constant 0 : i32
    %c0_i32_1 = arith.constant 0 : i32
    return %c0_i32, %c0_i32_0 : i32, i32
  }
  func.func @transform_7(%arg0: i32) -> (i32, i32) {
    %c0_i32 = arith.constant 0 : i32
    %c0_i32_0 = arith.constant 0 : i32
    return %arg0, %c0_i32 : i32, i32
  }
}

</mosaic_0001>

<bundles_post_ra>
// kernel: mlp_forward.1
= control target key start
LH: loop header
LB: loop body
LE: loop exit
PB: predicated region body
PF: predicated region fallthrough
CT: control target
= control target key end

     0   :  { %vm1253_vm0 = vcmask 130048   ;;  %s3922_s1 = inlined_call_operand.vmem [shape: bf16[784,512], index: 1, kind: input, shape index: {}]   ;;  %s3923_s0 = inlined_call_operand.vmem [shape: bf16[8,784], index: 0, kind: input, shape index: {}]   ;;  %s3924_s3 = inlined_call_operand.vmem [shape: bf16[512,256], index: 3, kind: input, shape index: {}]   ;;  %s3925_s2 = inlined_call_operand.vmem [shape: f32[1,512], index: 2, kind: input, shape index: {}]   ;;  %s3926_s5 = inlined_call_operand.vmem [shape: bf16[256,128], index: 5, kind: input, shape index: {}]   ;;  %s3927_s4 = inlined_call_operand.vmem [shape: f32[1,256], index: 4, kind: input, shape index: {}]   ;;  %s3928_s6 = inlined_call_operand.vmem [shape: f32[1,128], index: 6, kind: input, shape index: {}]   ;;  %s3929_s7 = inlined_call_operand.vmem [shape: f32[8,128], index: 7, kind: output, shape index: {}]  }
   0x1   :  { %v2564_v0 = vld [vmem:[%s3922_s1 + $0xe4] ss:$16 sps:$4 sm:$0xff]   ;;  %v2568_v2 = vld [vmem:[%s3922_s1 + $0xe0] ss:$16 sps:$4 sm:$0xff]   ;;  %v28_v50 = vld [vmem:[%s3923_s0 + $0x8] sm:$0xff] }
   0x2   :  { %v2566_v1 = vld [vmem:[%s3922_s1 + $0x2e4] ss:$16 sps:$4 sm:$0xff]   ;;  %1257 = vmatprep.subr.bf16.mxu0 %v2564_v0  ;;  %v2569_v3 = vld [vmem:[%s3922_s1 + $0x2e0] ss:$16 sps:$4 sm:$0xff]   ;;  %v3173_v52 = vcombine.high %v28_v50, %v28_v50 }
   0x3   :  { %1298 = vmatprep.subr.bf16.mxu1 %v2566_v1  ;;  %v2570_v4 = vld [vmem:[%s3922_s1 + $0xc4] ss:$16 sps:$4 sm:$0xff]   ;;  %1258 = vmatpush1.bf16.msra.mxu0 %v2568_v2  ;;  %v2574_v6 = vld [vmem:[%s3922_s1 + $0xc0] ss:$16 sps:$4 sm:$0xff]  }
   0x4   :  { %1299 = vmatpush1.bf16.msra.mxu1 %v2569_v3  ;;  %v2572_v5 = vld [vmem:[%s3922_s1 + $0x2c4] ss:$16 sps:$4 sm:$0xff]   ;;  %1259 = vmatprep.subr.bf16.mxu0 %v2570_v4  ;;  %v2575_v7 = vld [vmem:[%s3922_s1 + $0x2c0] ss:$16 sps:$4 sm:$0xff]  }
   0x5   :  { %1300 = vmatprep.subr.bf16.mxu1 %v2572_v5  ;;  %v2576_v8 = vld [vmem:[%s3922_s1 + $0xa4] ss:$16 sps:$4 sm:$0xff]   ;;  %v2580_v10 = vld [vmem:[%s3922_s1 + $0xa0] ss:$16 sps:$4 sm:$0xff]   ;;  %1330 = vmatprep.mubr.bf16.mxu1 %v3173_v52 }
   0x6   :  { %v2578_v9 = vld [vmem:[%s3922_s1 + $0x2a4] ss:$16 sps:$4 sm:$0xff]   ;;  %v2581_v11 = vld [vmem:[%s3922_s1 + $0x2a0] ss:$16 sps:$4 sm:$0xff]  }
   0x7   :  { %1260 = vmatpush1.bf16.msra.mxu0 %v2574_v6  ;;  %v2582_v12 = vld [vmem:[%s3922_s1 + $0x84] ss:$16 sps:$4 sm:$0xff]   ;;  %v2586_v14 = vld [vmem:[%s3922_s1 + $0x80] ss:$16 sps:$4 sm:$0xff]  }
   0x8   :  { %1301 = vmatpush1.bf16.msra.mxu1 %v2575_v7  ;;  %1261 = vmatprep.subr.bf16.mxu0 %v2576_v8  ;;  %v2584_v13 = vld [vmem:[%s3922_s1 + $0x284] ss:$16 sps:$4 sm:$0xff]   ;;  %v2587_v15 = vld [vmem:[%s3922_s1 + $0x280] ss:$16 sps:$4 sm:$0xff]   ;;  %v3230_v7 = vcombine.low %v28_v50, %v28_v50  ;;  %v2722_v50 = vld [vmem:[%s3922_s1 + $0x1e8] ss:$16 sps:$4 sm:$0xff]  }
   0x9   :  { %1302 = vmatprep.subr.bf16.mxu1 %v2578_v9  ;;  %v2588_v16 = vld [vmem:[%s3922_s1 + $0x64] ss:$16 sps:$4 sm:$0xff]   ;;  %v2592_v18 = vld [vmem:[%s3922_s1 + $0x60] ss:$16 sps:$4 sm:$0xff]  }
   0xa   :  { %v2590_v17 = vld [vmem:[%s3922_s1 + $0x264] ss:$16 sps:$4 sm:$0xff]   ;;  %v2593_v19 = vld [vmem:[%s3922_s1 + $0x260] ss:$16 sps:$4 sm:$0xff]  }
   0xb   :  { %1262 = vmatpush1.bf16.msra.mxu0 %v2580_v10  ;;  %v2594_v20 = vld [vmem:[%s3922_s1 + $0x44] ss:$16 sps:$4 sm:$0xff]   ;;  %v2598_v22 = vld [vmem:[%s3922_s1 + $0x40] ss:$16 sps:$4 sm:$0xff]  }
   0xc   :  { %1303 = vmatpush1.bf16.msra.mxu1 %v2581_v11  ;;  %1263 = vmatprep.subr.bf16.mxu0 %v2582_v12  ;;  %v2596_v21 = vld [vmem:[%s3922_s1 + $0x244] ss:$16 sps:$4 sm:$0xff]   ;;  %v2599_v23 = vld [vmem:[%s3922_s1 + $0x240] ss:$16 sps:$4 sm:$0xff]   ;;  %v2676_v11 = vld [vmem:[%s3922_s1 + $0xec] ss:$16 sps:$4 sm:$0xff]  }
   0xd   :  { %1304 = vmatprep.subr.bf16.mxu1 %v2584_v13  ;;  %v2600_v24 = vld [vmem:[%s3922_s1 + $0x24] ss:$16 sps:$4 sm:$0xff]   ;;  %v2604_v26 = vld [vmem:[%s3922_s1 + $0x20] ss:$16 sps:$4 sm:$0xff]   ;;  %v2977_v13 = vmov 0  }
   0xe   :  { %v2602_v25 = vld [vmem:[%s3922_s1 + $0x224] ss:$16 sps:$4 sm:$0xff]   ;;  %v2605_v27 = vld [vmem:[%s3922_s1 + $0x220] ss:$16 sps:$4 sm:$0xff]  }
   0xf   :  { %1264 = vmatpush1.bf16.msra.mxu0 %v2586_v14  ;;  %v2606_v28 = vld [vmem:[%s3922_s1 + $0x4] ss:$16 sps:$4 sm:$0xff]   ;;  %v2610_v30 = vld [vmem:[%s3922_s1] ss:$16 sps:$4 sm:$0xff]  }
  0x10   :  { %1305 = vmatpush1.bf16.msra.mxu1 %v2587_v15  ;;  %1265 = vmatprep.subr.bf16.mxu0 %v2588_v16  ;;  %v2608_v29 = vld [vmem:[%s3922_s1 + $0x204] ss:$16 sps:$4 sm:$0xff]   ;;  %v2611_v31 = vld [vmem:[%s3922_s1 + $0x200] ss:$16 sps:$4 sm:$0xff]   ;;  %v3256_v15 = vld [vmem:[%s3923_s0 + $0x18] ss:$0 sps:$4 sm:$0xff]  }
  0x11   :  { %1306 = vmatprep.subr.bf16.mxu1 %v2590_v17  ;;  %v2612_v32 = vld [vmem:[%s3922_s1 + $0x1e4] ss:$16 sps:$4 sm:$0xff]   ;;  %v2616_v34 = vld [vmem:[%s3922_s1 + $0x1e0] ss:$16 sps:$4 sm:$0xff]   ;;  %v2674_v16 = vld [vmem:[%s3922_s1 + $0xe8] ss:$16 sps:$4 sm:$0xff]  }
  0x12   :  { %v2614_v33 = vld [vmem:[%s3922_s1 + $0x3e4] ss:$16 sps:$4 sm:$0xff]   ;;  %v2617_v35 = vld [vmem:[%s3922_s1 + $0x3e0] ss:$16 sps:$4 sm:$0xff]  }
  0x13   :  { %1266 = vmatpush1.bf16.msra.mxu0 %v2592_v18  ;;  %v2618_v36 = vld [vmem:[%s3922_s1 + $0x1c4] ss:$16 sps:$4 sm:$0xff]   ;;  %v2622_v38 = vld [vmem:[%s3922_s1 + $0x1c0] ss:$16 sps:$4 sm:$0xff]   ;;  %v2682_v18 = vld [vmem:[%s3922_s1 + $0xcc] ss:$16 sps:$4 sm:$0xff]  }
  0x14   :  { %1307 = vmatpush1.bf16.msra.mxu1 %v2593_v19  ;;  %1267 = vmatprep.subr.bf16.mxu0 %v2594_v20  ;;  %v2620_v37 = vld [vmem:[%s3922_s1 + $0x3c4] ss:$16 sps:$4 sm:$0xff]   ;;  %v2623_v39 = vld [vmem:[%s3922_s1 + $0x3c0] ss:$16 sps:$4 sm:$0xff]   ;;  %v2680_v20 = vld [vmem:[%s3922_s1 + $0xc8] ss:$16 sps:$4 sm:$0xff]  }
  0x15   :  { %1308 = vmatprep.subr.bf16.mxu1 %v2596_v21  ;;  %v2624_v40 = vld [vmem:[%s3922_s1 + $0x1a4] ss:$16 sps:$4 sm:$0xff]   ;;  %v2628_v42 = vld [vmem:[%s3922_s1 + $0x1a0] ss:$16 sps:$4 sm:$0xff]  }
  0x16   :  { %v2626_v41 = vld [vmem:[%s3922_s1 + $0x3a4] ss:$16 sps:$4 sm:$0xff]   ;;  %v2629_v43 = vld [vmem:[%s3922_s1 + $0x3a0] ss:$16 sps:$4 sm:$0xff]  }
  0x17   :  { %1268 = vmatpush1.bf16.msra.mxu0 %v2598_v22  ;;  %v2630_v44 = vld [vmem:[%s3922_s1 + $0x184] ss:$16 sps:$4 sm:$0xff]   ;;  %v2634_v46 = vld [vmem:[%s3922_s1 + $0x180] ss:$16 sps:$4 sm:$0xff]   ;;  %v2688_v22 = vld [vmem:[%s3922_s1 + $0xac] ss:$16 sps:$4 sm:$0xff]  }
  0x18   :  { %1309 = vmatpush1.bf16.msra.mxu1 %v2599_v23  ;;  %1269 = vmatprep.subr.bf16.mxu0 %v2600_v24  ;;  %v2632_v45 = vld [vmem:[%s3922_s1 + $0x384] ss:$16 sps:$4 sm:$0xff]   ;;  %v2635_v48 = vld [vmem:[%s3922_s1 + $0x380] ss:$16 sps:$4 sm:$0xff]   ;;  %v2686_v24 = vld [vmem:[%s3922_s1 + $0xa8] ss:$16 sps:$4 sm:$0xff]  }
  0x19   :  { %1310 = vmatprep.subr.bf16.mxu1 %v2602_v25  ;;  %v27_v47 = vld [vmem:[%s3923_s0] sm:$0xff] }
  0x1a   :  { %v3165_v49 = vcombine.high %v27_v47, %v27_v47  ;;  %v2636_v51 = vld [vmem:[%s3922_s1 + $0x164] ss:$16 sps:$4 sm:$0xff]   ;;  %v2640_v54 = vld [vmem:[%s3922_s1 + $0x160] ss:$16 sps:$4 sm:$0xff]   ;;  %v3228_v6 = vcombine.low %v27_v47, %v27_v47 }
  0x1b   :  { %1270 = vmatpush1.bf16.msra.mxu0 %v2604_v26  ;;  %v2638_v53 = vld [vmem:[%s3922_s1 + $0x364] ss:$16 sps:$4 sm:$0xff]   ;;  %v2641_v55 = vld [vmem:[%s3922_s1 + $0x360] ss:$16 sps:$4 sm:$0xff]   ;;  %v2694_v26 = vld [vmem:[%s3922_s1 + $0x8c] ss:$16 sps:$4 sm:$0xff]  }
  0x1c   :  { %1311 = vmatpush1.bf16.msra.mxu1 %v2605_v27  ;;  %1271 = vmatprep.subr.bf16.mxu0 %v2606_v28  ;;  %v2642_v56 = vld [vmem:[%s3922_s1 + $0x144] ss:$16 sps:$4 sm:$0xff]   ;;  %v2646_v58 = vld [vmem:[%s3922_s1 + $0x140] ss:$16 sps:$4 sm:$0xff]   ;;  %v2692_v28 = vld [vmem:[%s3922_s1 + $0x88] ss:$16 sps:$4 sm:$0xff]  }
  0x1d   :  { %1312 = vmatprep.subr.bf16.mxu1 %v2608_v29  ;;  %1289 = vmatprep.mubr.bf16.mxu0 %v3165_v49  ;;  %v2644_v57 = vld [vmem:[%s3922_s1 + $0x344] ss:$16 sps:$4 sm:$0xff]   ;;  %v2647_v59 = vld [vmem:[%s3922_s1 + $0x340] ss:$16 sps:$4 sm:$0xff]  }
  0x1e   :  { %v2648_v60 = vld [vmem:[%s3922_s1 + $0x124] ss:$16 sps:$4 sm:$0xff]   ;;  %v2652_v62 = vld [vmem:[%s3922_s1 + $0x120] ss:$16 sps:$4 sm:$0xff]  }
  0x1f   :  { %1272 = vmatpush1.bf16.msra.mxu0 %v2610_v30  ;;  %v2650_v61 = vld [vmem:[%s3922_s1 + $0x324] ss:$16 sps:$4 sm:$0xff]   ;;  %v2653_v63 = vld [vmem:[%s3922_s1 + $0x320] ss:$16 sps:$4 sm:$0xff]   ;;  %v2700_v30 = vld [vmem:[%s3922_s1 + $0x6c] ss:$16 sps:$4 sm:$0xff]  }
  0x20   :  { %1313 = vmatpush1.bf16.msra.mxu1 %v2611_v31  ;;  %1273 = vmatprep.subr.bf16.mxu0 %v2612_v32  ;;  %v2654_v0 = vld [vmem:[%s3922_s1 + $0x104] ss:$16 sps:$4 sm:$0xff]   ;;  %v2658_v2 = vld [vmem:[%s3922_s1 + $0x100] ss:$16 sps:$4 sm:$0xff]  }
  0x21   :  { %1314 = vmatprep.subr.bf16.mxu1 %v2614_v33  ;;  %v2656_v1 = vld [vmem:[%s3922_s1 + $0x304] ss:$16 sps:$4 sm:$0xff]   ;;  %v2659_v3 = vld [vmem:[%s3922_s1 + $0x300] ss:$16 sps:$4 sm:$0xff]  }
  0x22   :  { %v2667_v4 = vld [vmem:[%s3922_s1 + $0x4e4] ss:$16 sps:$4 sm:$0xff]   ;;  %v2665_v8 = vld [vmem:[%s3922_s1 + $0x4e0] ss:$16 sps:$4 sm:$0xff]  }
  0x23   :  { %1274 = vmatpush2.bf16.msra.mxu0 %v2616_v34  ;;  %v2670_v5 = vld [vmem:[%s3922_s1 + $0x604] ss:$16 sps:$4 sm:$0xff]   ;;  %v2668_v9 = vld [vmem:[%s3922_s1 + $0x600] ss:$16 sps:$4 sm:$0xff]   ;;  %v2698_v34 = vld [vmem:[%s3922_s1 + $0x68] ss:$16 sps:$4 sm:$0xff]  }
  0x24   :  { %1315 = vmatpush2.bf16.msra.mxu1 %v2617_v35  ;;  %1275 = vmatprep.subr.bf16.mxu0 %v2618_v36  ;;  %v2673_v10 = vld [vmem:[%s3922_s1 + $0x4c4] ss:$16 sps:$4 sm:$0xff]   ;;  %v2671_v12 = vld [vmem:[%s3922_s1 + $0x4c0] ss:$16 sps:$4 sm:$0xff]   ;;  %v2706_v36 = vld [vmem:[%s3922_s1 + $0x4c] ss:$16 sps:$4 sm:$0xff]  }
  0x25   :  { %1316 = vmatprep.subr.bf16.mxu1 %v2620_v37  ;;  %v2679_v14 = vld [vmem:[%s3922_s1 + $0x4a4] ss:$16 sps:$4 sm:$0xff]   ;;  %v2677_v17 = vld [vmem:[%s3922_s1 + $0x4a0] ss:$16 sps:$4 sm:$0xff]  }
  0x26   :  { %v2685_v19 = vld [vmem:[%s3922_s1 + $0x484] ss:$16 sps:$4 sm:$0xff]   ;;  %v2683_v21 = vld [vmem:[%s3922_s1 + $0x480] ss:$16 sps:$4 sm:$0xff]  }
  0x27   :  { %1276 = vmatpush2.bf16.msra.mxu0 %v2622_v38  ;;  %v2691_v23 = vld [vmem:[%s3922_s1 + $0x464] ss:$16 sps:$4 sm:$0xff]   ;;  %v2689_v25 = vld [vmem:[%s3922_s1 + $0x460] ss:$16 sps:$4 sm:$0xff]   ;;  %v2704_v38 = vld [vmem:[%s3922_s1 + $0x48] ss:$16 sps:$4 sm:$0xff]  }
  0x28   :  { %1317 = vmatpush2.bf16.msra.mxu1 %v2623_v39  ;;  %1277 = vmatprep.subr.bf16.mxu0 %v2624_v40  ;;  %v2697_v27 = vld [vmem:[%s3922_s1 + $0x444] ss:$16 sps:$4 sm:$0xff]   ;;  %v2695_v29 = vld [vmem:[%s3922_s1 + $0x440] ss:$16 sps:$4 sm:$0xff]   ;;  %v2712_v40 = vld [vmem:[%s3922_s1 + $0x2c] ss:$16 sps:$4 sm:$0xff]  }
  0x29   :  { %1318 = vmatprep.subr.bf16.mxu1 %v2626_v41  ;;  %v2703_v31 = vld [vmem:[%s3922_s1 + $0x424] ss:$16 sps:$4 sm:$0xff]   ;;  %v2701_v35 = vld [vmem:[%s3922_s1 + $0x420] ss:$16 sps:$4 sm:$0xff]  }
  0x2a   :  { %v3312_v32 = vld [vmem:[%s3923_s0 + $0x10] sm:$0xff] }
  0x2b   :  { %1278 = vmatpush2.bf16.msra.mxu0 %v2628_v42  ;;  %v3316_v33 = vcombine.high %v3312_v32, %v3312_v32  ;;  %v2709_v37 = vld [vmem:[%s3922_s1 + $0x404] ss:$16 sps:$4 sm:$0xff]   ;;  %v2707_v39 = vld [vmem:[%s3922_s1 + $0x400] ss:$16 sps:$4 sm:$0xff]   ;;  %v2710_v42 = vld [vmem:[%s3922_s1 + $0x28] ss:$16 sps:$4 sm:$0xff]  }
  0x2c   :  { %1319 = vmatpush2.bf16.msra.mxu1 %v2629_v43  ;;  %1279 = vmatprep.subr.bf16.mxu0 %v2630_v44  ;;  %v2715_v41 = vld [vmem:[%s3922_s1 + $0x5e4] ss:$16 sps:$4 sm:$0xff]   ;;  %v2713_v43 = vld [vmem:[%s3922_s1 + $0x5e0] ss:$16 sps:$4 sm:$0xff]   ;;  %v2718_v44 = vld [vmem:[%s3922_s1 + $0xc] ss:$16 sps:$4 sm:$0xff]  }
  0x2d   :  { %1320 = vmatprep.subr.bf16.mxu1 %v2632_v45  ;;  %v2721_v45 = vld [vmem:[%s3922_s1 + $0x5c4] ss:$16 sps:$4 sm:$0xff]   ;;  %v2719_v47 = vld [vmem:[%s3922_s1 + $0x5c0] ss:$16 sps:$4 sm:$0xff]  }
  0x2f   :  { %1280 = vmatpush2.bf16.msra.mxu0 %v2634_v46  ;;  %v2716_v46 = vld [vmem:[%s3922_s1 + $0x8] ss:$16 sps:$4 sm:$0xff]  }
  0x30   :  { %1321 = vmatpush2.bf16.msra.mxu1 %v2635_v48  ;;  %1281 = vmatprep.subr.bf16.mxu0 %v2636_v51  ;;  %v2724_v48 = vld [vmem:[%s3922_s1 + $0x1ec] ss:$16 sps:$4 sm:$0xff]   ;;  %v2725_v51 = vld [vmem:[%s3922_s1 + $0x5a0] ss:$16 sps:$4 sm:$0xff]  }
  0x31   :  { %1322 = vmatprep.subr.bf16.mxu1 %v2638_v53  ;;  %v2730_v53 = vld [vmem:[%s3922_s1 + $0x1cc] ss:$16 sps:$4 sm:$0xff]  }
  0x33   :  { %1282 = vmatpush2.bf16.msra.mxu0 %v2640_v54  ;;  %v2733_v54 = vld [vmem:[%s3922_s1 + $0x584] ss:$16 sps:$4 sm:$0xff]  }
  0x34   :  { %1323 = vmatpush2.bf16.msra.mxu1 %v2641_v55  ;;  %1283 = vmatprep.subr.bf16.mxu0 %v2642_v56  ;;  %v2728_v55 = vld [vmem:[%s3922_s1 + $0x1c8] ss:$16 sps:$4 sm:$0xff]   ;;  %v2731_v56 = vld [vmem:[%s3922_s1 + $0x580] ss:$16 sps:$4 sm:$0xff]  }
  0x35   :  { %1324 = vmatprep.subr.bf16.mxu1 %v2644_v57  ;;  %v2736_v57 = vld [vmem:[%s3922_s1 + $0x1ac] ss:$16 sps:$4 sm:$0xff]  }
  0x37   :  { %1284 = vmatpush2.bf16.msra.mxu0 %v2646_v58  ;;  %v2739_v58 = vld [vmem:[%s3922_s1 + $0x564] ss:$16 sps:$4 sm:$0xff]  }
  0x38   :  { %1325 = vmatpush2.bf16.msra.mxu1 %v2647_v59  ;;  %1285 = vmatprep.subr.bf16.mxu0 %v2648_v60  ;;  %v2734_v59 = vld [vmem:[%s3922_s1 + $0x1a8] ss:$16 sps:$4 sm:$0xff]   ;;  %v2737_v60 = vld [vmem:[%s3922_s1 + $0x560] ss:$16 sps:$4 sm:$0xff]  }
  0x39   :  { %1326 = vmatprep.subr.bf16.mxu1 %v2650_v61  ;;  %v2742_v61 = vld [vmem:[%s3922_s1 + $0x18c] ss:$16 sps:$4 sm:$0xff]  }
  0x3b   :  { %1286 = vmatpush2.bf16.msra.mxu0 %v2652_v62  ;;  %v2745_v62 = vld [vmem:[%s3922_s1 + $0x544] ss:$16 sps:$4 sm:$0xff]  }
  0x3c   :  { %1327 = vmatpush2.bf16.msra.mxu1 %v2653_v63  ;;  %1287 = vmatprep.subr.bf16.mxu0 %v2654_v0  ;;  %v2740_v63 = vld [vmem:[%s3922_s1 + $0x188] ss:$16 sps:$4 sm:$0xff]   ;;  %v2743_v0 = vld [vmem:[%s3922_s1 + $0x540] ss:$16 sps:$4 sm:$0xff]  }
  0x3d   :  { %1328 = vmatprep.subr.bf16.mxu1 %v2656_v1  ;;  %v2748_v1 = vld [vmem:[%s3922_s1 + $0x16c] ss:$16 sps:$4 sm:$0xff]  }
  0x3f   :  { %1288 = vmatpush2.bf16.msra.mxu0 %v2658_v2  ;;  %v2751_v2 = vld [vmem:[%s3922_s1 + $0x524] ss:$16 sps:$4 sm:$0xff]  }
  0x40   :  { %1329 = vmatpush2.bf16.msra.mxu1 %v2659_v3  ;;  %1339 = vmatprep.subr.bf16.mxu0 %v2667_v4  ;;  %v2746_v3 = vld [vmem:[%s3922_s1 + $0x168] ss:$16 sps:$4 sm:$0xff]   ;;  %v2749_v4 = vld [vmem:[%s3922_s1 + $0x520] ss:$16 sps:$4 sm:$0xff]  }
  0x41   :  { %1394 = vmatprep.subr.bf16.mxu1 %v2670_v5  ;;  %v2754_v5 = vld [vmem:[%s3922_s1 + $0x14c] ss:$16 sps:$4 sm:$0xff]  }
  0x42   :  { %1290 = vmatmul.mubr.bf16.vlgmr.msra.gmra.mxu0 %v3228_v6 }
  0x43   :  { %1331 = vmatmul.mubr.bf16.vlgmr.msra.gmra.mxu1 %v3230_v7  ;;  %1340 = vmatpush1.bf16.msra.mxu0 %v2665_v8  ;;  %v2757_v8 = vld [vmem:[%s3922_s1 + $0x504] ss:$16 sps:$4 sm:$0xff]  }
  0x44   :  { %1395 = vmatpush1.bf16.msra.mxu1 %v2668_v9  ;;  %1341 = vmatprep.subr.bf16.mxu0 %v2673_v10  ;;  %v2752_v9 = vld [vmem:[%s3922_s1 + $0x148] ss:$16 sps:$4 sm:$0xff]   ;;  %v2755_v10 = vld [vmem:[%s3922_s1 + $0x500] ss:$16 sps:$4 sm:$0xff]  }
  0x45   :  { %1412 = vmatprep.mubr.bf16.mxu1 %v2977_v13  ;;  %1421 = vmatprep.subr.bf16.mxu1 %v2676_v11  ;;  %v2762_v11 = vld [vmem:[%s3922_s1 + $0x12c] ss:$16 sps:$4 sm:$0xff]  }
  0x46   :  { %1371 = vmatprep.mubr.bf16.mxu0 %v3316_v33 }
  0x47   :  { %1342 = vmatpush1.bf16.msra.mxu0 %v2671_v12  ;;  %v2765_v12 = vld [vmem:[%s3922_s1 + $0x2ec] ss:$16 sps:$4 sm:$0xff]  }
  0x48   :  { %1343 = vmatprep.subr.bf16.mxu0 %v2679_v14  ;;  %v3441_v14 = vcombine.low %v3312_v32, %v3312_v32  ;;  %v2792_v32 = vld [vmem:[%s3922_s1 + $0x48c] ss:$16 sps:$4 sm:$0xff]  }
  0x4b   :  { %2458 = vmatmul.mubr.msk.bf16.vlgmr.msra.gmra.mxu1 %vm1253_vm0, %v3256_v15  ;;  %1344 = vmatpush1.bf16.msra.mxu0 %v2677_v17  ;;  %v2763_v17 = vld [vmem:[%s3922_s1 + $0x2e8] ss:$16 sps:$4 sm:$0xff]  }
  0x4c   :  { %1422 = vmatpush1.bf16.msra.mxu1 %v2674_v16  ;;  %1345 = vmatprep.subr.bf16.mxu0 %v2685_v19  ;;  %v2760_v16 = vld [vmem:[%s3922_s1 + $0x128] ss:$16 sps:$4 sm:$0xff]   ;;  %v2771_v19 = vld [vmem:[%s3922_s1 + $0x2cc] ss:$16 sps:$4 sm:$0xff]  }
  0x4d   :  { %1423 = vmatprep.subr.bf16.mxu1 %v2682_v18  ;;  %1453 = vmatprep.mubr.bf16.mxu1 %v3165_v49  ;;  %v2727_v49 = vld [vmem:[%s3922_s1 + $0x5a4] ss:$16 sps:$4 sm:$0xff]   ;;  %v2768_v18 = vld [vmem:[%s3922_s1 + $0x10c] ss:$16 sps:$4 sm:$0xff]  }
  0x4f   :  { %1346 = vmatpush1.bf16.msra.mxu0 %v2683_v21  ;;  %v2769_v21 = vld [vmem:[%s3922_s1 + $0x2c8] ss:$16 sps:$4 sm:$0xff]  }
  0x50   :  { %1424 = vmatpush1.bf16.msra.mxu1 %v2680_v20  ;;  %1347 = vmatprep.subr.bf16.mxu0 %v2691_v23  ;;  %v2766_v20 = vld [vmem:[%s3922_s1 + $0x108] ss:$16 sps:$4 sm:$0xff]   ;;  %v2777_v23 = vld [vmem:[%s3922_s1 + $0x2ac] ss:$16 sps:$4 sm:$0xff]  }
  0x51   :  { %1425 = vmatprep.subr.bf16.mxu1 %v2688_v22  ;;  %v2774_v22 = vld [vmem:[%s3922_s1 + $0x4ec] ss:$16 sps:$4 sm:$0xff]  }
  0x53   :  { %1348 = vmatpush1.bf16.msra.mxu0 %v2689_v25  ;;  %v2775_v25 = vld [vmem:[%s3922_s1 + $0x2a8] ss:$16 sps:$4 sm:$0xff]  }
  0x54   :  { %1426 = vmatpush1.bf16.msra.mxu1 %v2686_v24  ;;  %1349 = vmatprep.subr.bf16.mxu0 %v2697_v27  ;;  %v2772_v24 = vld [vmem:[%s3922_s1 + $0x4e8] ss:$16 sps:$4 sm:$0xff]  }
  0x55   :  { %1427 = vmatprep.subr.bf16.mxu1 %v2694_v26  ;;  %v2780_v26 = vld [vmem:[%s3922_s1 + $0x4cc] ss:$16 sps:$4 sm:$0xff]   ;;  %v2778_v27 = vld [vmem:[%s3922_s1 + $0x4c8] ss:$16 sps:$4 sm:$0xff]  }
  0x57   :  { %1350 = vmatpush1.bf16.msra.mxu0 %v2695_v29  ;;  %v2786_v29 = vld [vmem:[%s3922_s1 + $0x4ac] ss:$16 sps:$4 sm:$0xff]  }
  0x58   :  { %1428 = vmatpush1.bf16.msra.mxu1 %v2692_v28  ;;  %1351 = vmatprep.subr.bf16.mxu0 %v2703_v31  ;;  %v2781_v28 = vld [vmem:[%s3922_s1 + $0x288] ss:$16 sps:$4 sm:$0xff]  }
  0x59   :  { %1429 = vmatprep.subr.bf16.mxu1 %v2700_v30  ;;  %v2784_v30 = vld [vmem:[%s3922_s1 + $0x4a8] ss:$16 sps:$4 sm:$0xff]  }
  0x5a   :  { %v2787_v31 = vld [vmem:[%s3922_s1 + $0x268] ss:$16 sps:$4 sm:$0xff]  }
  0x5b   :  { %1352 = vmatpush1.bf16.msra.mxu0 %v2701_v35  ;;  %v2793_v35 = vld [vmem:[%s3922_s1 + $0x248] ss:$16 sps:$4 sm:$0xff]  }
  0x5c   :  { %1430 = vmatpush1.bf16.msra.mxu1 %v2698_v34  ;;  %1353 = vmatprep.subr.bf16.mxu0 %v2709_v37  ;;  %v2795_v34 = vld [vmem:[%s3922_s1 + $0x24c] ss:$16 sps:$4 sm:$0xff]  }
  0x5d   :  { %1431 = vmatprep.subr.bf16.mxu1 %v2706_v36  ;;  %v2798_v36 = vld [vmem:[%s3922_s1 + $0x46c] ss:$16 sps:$4 sm:$0xff]  }
  0x5e   :  { %v2801_v37 = vld [vmem:[%s3922_s1 + $0x22c] ss:$16 sps:$4 sm:$0xff]  }
  0x5f   :  { %1354 = vmatpush1.bf16.msra.mxu0 %v2707_v39  ;;  %v2799_v39 = vld [vmem:[%s3922_s1 + $0x228] ss:$16 sps:$4 sm:$0xff]  }
  0x60   :  { %1432 = vmatpush1.bf16.msra.mxu1 %v2704_v38  ;;  %1355 = vmatprep.subr.bf16.mxu0 %v2715_v41  ;;  %v2796_v38 = vld [vmem:[%s3922_s1 + $0x468] ss:$16 sps:$4 sm:$0xff]   ;;  %v2807_v41 = vld [vmem:[%s3922_s1 + $0x20c] ss:$16 sps:$4 sm:$0xff]  }
  0x61   :  { %1433 = vmatprep.subr.bf16.mxu1 %v2712_v40  ;;  %v2804_v40 = vld [vmem:[%s3922_s1 + $0x44c] ss:$16 sps:$4 sm:$0xff]  }
  0x63   :  { %1356 = vmatpush2.bf16.msra.mxu0 %v2713_v43  ;;  %v2805_v43 = vld [vmem:[%s3922_s1 + $0x208] ss:$16 sps:$4 sm:$0xff]  }
  0x64   :  { %1434 = vmatpush1.bf16.msra.mxu1 %v2710_v42  ;;  %1357 = vmatprep.subr.bf16.mxu0 %v2721_v45  ;;  %v2802_v42 = vld [vmem:[%s3922_s1 + $0x448] ss:$16 sps:$4 sm:$0xff]   ;;  %v2813_v45 = vld [vmem:[%s3922_s1 + $0x3ec] ss:$16 sps:$4 sm:$0xff]  }
  0x65   :  { %1435 = vmatprep.subr.bf16.mxu1 %v2718_v44  ;;  %v2810_v44 = vld [vmem:[%s3922_s1 + $0x42c] ss:$16 sps:$4 sm:$0xff]  }
  0x67   :  { %1358 = vmatpush2.bf16.msra.mxu0 %v2719_v47  ;;  %v2811_v47 = vld [vmem:[%s3922_s1 + $0x3e8] ss:$16 sps:$4 sm:$0xff]  }
  0x68   :  { %1436 = vmatpush1.bf16.msra.mxu1 %v2716_v46  ;;  %1359 = vmatprep.subr.bf16.mxu0 %v2727_v49  ;;  %v2808_v46 = vld [vmem:[%s3922_s1 + $0x428] ss:$16 sps:$4 sm:$0xff]   ;;  %v2819_v49 = vld [vmem:[%s3922_s1 + $0x3cc] ss:$16 sps:$4 sm:$0xff]  }
  0x69   :  { %1437 = vmatprep.subr.bf16.mxu1 %v2724_v48  ;;  %v2816_v48 = vld [vmem:[%s3922_s1 + $0x40c] ss:$16 sps:$4 sm:$0xff]  }
  0x6b   :  { %1360 = vmatpush2.bf16.msra.mxu0 %v2725_v51  ;;  %v2817_v51 = vld [vmem:[%s3922_s1 + $0x3c8] ss:$16 sps:$4 sm:$0xff]  }
  0x6c   :  { %1438 = vmatpush2.bf16.msra.mxu1 %v2722_v50  ;;  %1361 = vmatprep.subr.bf16.mxu0 %v2733_v54  ;;  %v2814_v50 = vld [vmem:[%s3922_s1 + $0x408] ss:$16 sps:$4 sm:$0xff]   ;;  %v2825_v54 = vld [vmem:[%s3922_s1 + $0x3ac] ss:$16 sps:$4 sm:$0xff]  }
  0x6d   :  { %1439 = vmatprep.subr.bf16.mxu1 %v2730_v53  ;;  %v2822_v53 = vld [vmem:[%s3922_s1 + $0x5ec] ss:$16 sps:$4 sm:$0xff]  }
  0x6f   :  { %1362 = vmatpush2.bf16.msra.mxu0 %v2731_v56  ;;  %v2823_v56 = vld [vmem:[%s3922_s1 + $0x3a8] ss:$16 sps:$4 sm:$0xff]  }
  0x70   :  { %1440 = vmatpush2.bf16.msra.mxu1 %v2728_v55  ;;  %1363 = vmatprep.subr.bf16.mxu0 %v2739_v58  ;;  %v2820_v55 = vld [vmem:[%s3922_s1 + $0x5e8] ss:$16 sps:$4 sm:$0xff]   ;;  %v2831_v58 = vld [vmem:[%s3922_s1 + $0x38c] ss:$16 sps:$4 sm:$0xff]  }
  0x71   :  { %1441 = vmatprep.subr.bf16.mxu1 %v2736_v57  ;;  %v2828_v57 = vld [vmem:[%s3922_s1 + $0x5cc] ss:$16 sps:$4 sm:$0xff]  }
  0x73   :  { %1364 = vmatpush2.bf16.msra.mxu0 %v2737_v60  ;;  %v2829_v60 = vld [vmem:[%s3922_s1 + $0x388] ss:$16 sps:$4 sm:$0xff]  }
  0x74   :  { %1442 = vmatpush2.bf16.msra.mxu1 %v2734_v59  ;;  %1365 = vmatprep.subr.bf16.mxu0 %v2745_v62  ;;  %v2826_v59 = vld [vmem:[%s3922_s1 + $0x5c8] ss:$16 sps:$4 sm:$0xff]   ;;  %v2837_v62 = vld [vmem:[%s3922_s1 + $0x36c] ss:$16 sps:$4 sm:$0xff]  }
  0x75   :  { %1443 = vmatprep.subr.bf16.mxu1 %v2742_v61  ;;  %v2834_v61 = vld [vmem:[%s3922_s1 + $0x5ac] ss:$16 sps:$4 sm:$0xff]  }
  0x77   :  { %1366 = vmatpush2.bf16.msra.mxu0 %v2743_v0  ;;  %v2835_v0 = vld [vmem:[%s3922_s1 + $0x368] ss:$16 sps:$4 sm:$0xff]  }
  0x78   :  { %1444 = vmatpush2.bf16.msra.mxu1 %v2740_v63  ;;  %1367 = vmatprep.subr.bf16.mxu0 %v2751_v2  ;;  %v2832_v63 = vld [vmem:[%s3922_s1 + $0x5a8] ss:$16 sps:$4 sm:$0xff]   ;;  %v2843_v2 = vld [vmem:[%s3922_s1 + $0x34c] ss:$16 sps:$4 sm:$0xff]  }
  0x79   :  { %1445 = vmatprep.subr.bf16.mxu1 %v2748_v1  ;;  %v2840_v1 = vld [vmem:[%s3922_s1 + $0x58c] ss:$16 sps:$4 sm:$0xff]  }
  0x7b   :  { %1368 = vmatpush2.bf16.msra.mxu0 %v2749_v4  ;;  %v2841_v4 = vld [vmem:[%s3922_s1 + $0x348] ss:$16 sps:$4 sm:$0xff]  }
  0x7c   :  { %1446 = vmatpush2.bf16.msra.mxu1 %v2746_v3  ;;  %1369 = vmatprep.subr.bf16.mxu0 %v2757_v8  ;;  %v2838_v3 = vld [vmem:[%s3922_s1 + $0x588] ss:$16 sps:$4 sm:$0xff]   ;;  %v2849_v8 = vld [vmem:[%s3922_s1 + $0x32c] ss:$16 sps:$4 sm:$0xff]  }
  0x7d   :  { %1447 = vmatprep.subr.bf16.mxu1 %v2754_v5  ;;  %v2846_v5 = vld [vmem:[%s3922_s1 + $0x56c] ss:$16 sps:$4 sm:$0xff]  }
  0x7f   :  { %1370 = vmatpush2.bf16.msra.mxu0 %v2755_v10  ;;  %v2847_v10 = vld [vmem:[%s3922_s1 + $0x328] ss:$16 sps:$4 sm:$0xff]  }
  0x80   :  { %1448 = vmatpush2.bf16.msra.mxu1 %v2752_v9  ;;  %1462 = vmatprep.subr.bf16.mxu0 %v2765_v12  ;;  %v2844_v9 = vld [vmem:[%s3922_s1 + $0x568] ss:$16 sps:$4 sm:$0xff]   ;;  %v2855_v12 = vld [vmem:[%s3922_s1 + $0x30c] ss:$16 sps:$4 sm:$0xff]  }
  0x81   :  { %1449 = vmatprep.subr.bf16.mxu1 %v2762_v11  ;;  %v2852_v11 = vld [vmem:[%s3922_s1 + $0x54c] ss:$16 sps:$4 sm:$0xff]  }
  0x82   :  { %1372 = vmatmul.mubr.bf16.vlgmr.msra.gmra.mxu0 %v3441_v14 }
  0x83   :  { %1463 = vmatpush1.bf16.msra.mxu0 %v2763_v17  ;;  %1494 = vmatprep.mubr.bf16.mxu0 %v3173_v52  ;;  %v2783_v52 = vld [vmem:[%s3922_s1 + $0x28c] ss:$16 sps:$4 sm:$0xff]   ;;  %v2853_v17 = vld [vmem:[%s3922_s1 + $0x308] ss:$16 sps:$4 sm:$0xff]  }
  0x84   :  { %1450 = vmatpush2.bf16.msra.mxu1 %v2760_v16  ;;  %1464 = vmatprep.subr.bf16.mxu0 %v2771_v19  ;;  %v2850_v16 = vld [vmem:[%s3922_s1 + $0x548] ss:$16 sps:$4 sm:$0xff]   ;;  %v2867_v19 = vld [vmem:[%s3924_s3 + $0x74] ss:$8 sps:$4 sm:$0xff]  }
  0x85   :  { %1451 = vmatprep.subr.bf16.mxu1 %v2768_v18  ;;  %v2858_v18 = vld [vmem:[%s3922_s1 + $0x52c] ss:$16 sps:$4 sm:$0xff]  }
  0x87   :  { %1465 = vmatpush1.bf16.msra.mxu0 %v2769_v21  ;;  %v2865_v21 = vld [vmem:[%s3924_s3 + $0x70] ss:$8 sps:$4 sm:$0xff]  }
  0x88   :  { %1452 = vmatpush2.bf16.msra.mxu1 %v2766_v20  ;;  %1466 = vmatprep.subr.bf16.mxu0 %v2777_v23  ;;  %v2856_v20 = vld [vmem:[%s3922_s1 + $0x528] ss:$16 sps:$4 sm:$0xff]   ;;  %v2870_v23 = vld [vmem:[%s3924_s3 + $0x64] ss:$8 sps:$4 sm:$0xff]  }
  0x89   :  { %1503 = vmatprep.subr.bf16.mxu1 %v2774_v22  ;;  %v2861_v22 = vld [vmem:[%s3922_s1 + $0x50c] ss:$16 sps:$4 sm:$0xff]  }
  0x8b   :  { %1454 = vmatmul.mubr.bf16.vlgmr.msra.gmra.mxu1 %v3228_v6  ;;  %1467 = vmatpush1.bf16.msra.mxu0 %v2775_v25  ;;  %v2789_v6 = vld [vmem:[%s3922_s1 + $0x26c] ss:$16 sps:$4 sm:$0xff]   ;;  %v2868_v25 = vld [vmem:[%s3924_s3 + $0x60] ss:$8 sps:$4 sm:$0xff]  }
  0x8c   :  { %1504 = vmatpush1.bf16.msra.mxu1 %v2772_v24  ;;  %1468 = vmatprep.subr.bf16.mxu0 %v2783_v52  ;;  %v2859_v24 = vld [vmem:[%s3922_s1 + $0x508] ss:$16 sps:$4 sm:$0xff]  }
  0x8d   :  { %1505 = vmatprep.subr.bf16.mxu1 %v2780_v26  ;;  %1535 = vmatprep.mubr.bf16.mxu1 %v3316_v33  ;;  %v2790_v33 = vld [vmem:[%s3922_s1 + $0x488] ss:$16 sps:$4 sm:$0xff]   ;;  %v2864_v26 = vld [vmem:[%s3922_s1 + $0x60c] ss:$16 sps:$4 sm:$0xff]  }
  0x8e   :  { %v2862_v52 = vld [vmem:[%s3922_s1 + $0x608] ss:$16 sps:$4 sm:$0xff]  }
  0x8f   :  { %1469 = vmatpush1.bf16.msra.mxu0 %v2781_v28  ;;  %v2876_v28 = vld [vmem:[%s3924_s3 + $0x44] ss:$8 sps:$4 sm:$0xff]  }
  0x90   :  { %1506 = vmatpush1.bf16.msra.mxu1 %v2778_v27  ;;  %1470 = vmatprep.subr.bf16.mxu0 %v2789_v6  ;;  %v2871_v27 = vld [vmem:[%s3924_s3 + $0x50] ss:$8 sps:$4 sm:$0xff]   ;;  %v2879_v6 = vld [vmem:[%s3924_s3 + $0x34] ss:$8 sps:$4 sm:$0xff]  }
  0x91   :  { %1507 = vmatprep.subr.bf16.mxu1 %v2786_v29  ;;  %v2874_v29 = vld [vmem:[%s3924_s3 + $0x40] ss:$8 sps:$4 sm:$0xff]  }
  0x93   :  { %1471 = vmatpush1.bf16.msra.mxu0 %v2787_v31  ;;  %v2882_v31 = vld [vmem:[%s3924_s3 + $0x24] ss:$8 sps:$4 sm:$0xff]  }
  0x94   :  { %1508 = vmatpush1.bf16.msra.mxu1 %v2784_v30  ;;  %1472 = vmatprep.subr.bf16.mxu0 %v2795_v34  ;;  %v2877_v30 = vld [vmem:[%s3924_s3 + $0x30] ss:$8 sps:$4 sm:$0xff]   ;;  %v2916_v34 = vld [vmem:[%s3924_s3 + $0x160] ss:$8 sps:$4 sm:$0xff]  }
  0x95   :  { %1509 = vmatprep.subr.bf16.mxu1 %v2792_v32  ;;  %v2918_v32 = vld [vmem:[%s3924_s3 + $0x164] ss:$8 sps:$4 sm:$0xff]  }
  0x97   :  { %1473 = vmatpush1.bf16.msra.mxu0 %v2793_v35  ;;  %v2921_v35 = vld [vmem:[%s3924_s3 + $0x154] ss:$8 sps:$4 sm:$0xff]  }
  0x98   :  { %1510 = vmatpush1.bf16.msra.mxu1 %v2790_v33  ;;  %1474 = vmatprep.subr.bf16.mxu0 %v2801_v37  ;;  %v2880_v33 = vld [vmem:[%s3924_s3 + $0x20] ss:$8 sps:$4 sm:$0xff]   ;;  %v2883_v37 = vld [vmem:[%s3924_s3 + $0x10] ss:$8 sps:$4 sm:$0xff]  }
  0x99   :  { %1511 = vmatprep.subr.bf16.mxu1 %v2798_v36  ;;  %v2919_v36 = vld [vmem:[%s3924_s3 + $0x150] ss:$8 sps:$4 sm:$0xff]  }
  0x9b   :  { %1475 = vmatpush1.bf16.msra.mxu0 %v2799_v39  ;;  %v2888_v39 = vld [vmem:[%s3924_s3 + $0x4] ss:$8 sps:$4 sm:$0xff]  }
  0x9c   :  { %1512 = vmatpush1.bf16.msra.mxu1 %v2796_v38  ;;  %1476 = vmatprep.subr.bf16.mxu0 %v2807_v41  ;;  %v2924_v38 = vld [vmem:[%s3924_s3 + $0x144] ss:$8 sps:$4 sm:$0xff]   ;;  %v2886_v41 = vld [vmem:[%s3924_s3] ss:$8 sps:$4 sm:$0xff]  }
  0x9d   :  { %1513 = vmatprep.subr.bf16.mxu1 %v2804_v40  ;;  %v2922_v40 = vld [vmem:[%s3924_s3 + $0x140] ss:$8 sps:$4 sm:$0xff]  }
  0x9f   :  { %1477 = vmatpush1.bf16.msra.mxu0 %v2805_v43  ;;  %v2891_v43 = vld [vmem:[%s3924_s3 + $0xf4] ss:$8 sps:$4 sm:$0xff]  }
  0xa0   :  { %1514 = vmatpush1.bf16.msra.mxu1 %v2802_v42  ;;  %1478 = vmatprep.subr.bf16.mxu0 %v2813_v45  ;;  %v2927_v42 = vld [vmem:[%s3924_s3 + $0x134] ss:$8 sps:$4 sm:$0xff]   ;;  %v2889_v45 = vld [vmem:[%s3924_s3 + $0xf0] ss:$8 sps:$4 sm:$0xff]  }
  0xa1   :  { %1515 = vmatprep.subr.bf16.mxu1 %v2810_v44  ;;  %v2925_v44 = vld [vmem:[%s3924_s3 + $0x130] ss:$8 sps:$4 sm:$0xff]  }
  0xa3   :  { %1479 = vmatpush2.bf16.msra.mxu0 %v2811_v47  ;;  %v2894_v47 = vld [vmem:[%s3924_s3 + $0xe4] ss:$8 sps:$4 sm:$0xff]  }
  0xa4   :  { %1516 = vmatpush1.bf16.msra.mxu1 %v2808_v46  ;;  %1480 = vmatprep.subr.bf16.mxu0 %v2819_v49  ;;  %v2930_v46 = vld [vmem:[%s3924_s3 + $0x124] ss:$8 sps:$4 sm:$0xff]   ;;  %v2892_v49 = vld [vmem:[%s3924_s3 + $0xe0] ss:$8 sps:$4 sm:$0xff]  }
  0xa5   :  { %1517 = vmatprep.subr.bf16.mxu1 %v2816_v48  ;;  %v2928_v48 = vld [vmem:[%s3924_s3 + $0x120] ss:$8 sps:$4 sm:$0xff]  }
  0xa7   :  { %1481 = vmatpush2.bf16.msra.mxu0 %v2817_v51  ;;  %v2897_v51 = vld [vmem:[%s3924_s3 + $0xd4] ss:$8 sps:$4 sm:$0xff]  }
  0xa8   :  { %1518 = vmatpush1.bf16.msra.mxu1 %v2814_v50  ;;  %1482 = vmatprep.subr.bf16.mxu0 %v2825_v54  ;;  %v2933_v50 = vld [vmem:[%s3924_s3 + $0x114] ss:$8 sps:$4 sm:$0xff]   ;;  %v2895_v54 = vld [vmem:[%s3924_s3 + $0xd0] ss:$8 sps:$4 sm:$0xff]  }
  0xa9   :  { %1519 = vmatprep.subr.bf16.mxu1 %v2822_v53  ;;  %v2931_v53 = vld [vmem:[%s3924_s3 + $0x110] ss:$8 sps:$4 sm:$0xff]  }
  0xab   :  { %1483 = vmatpush2.bf16.msra.mxu0 %v2823_v56  ;;  %v2900_v56 = vld [vmem:[%s3924_s3 + $0xc4] ss:$8 sps:$4 sm:$0xff]  }
  0xac   :  { %1520 = vmatpush2.bf16.msra.mxu1 %v2820_v55  ;;  %1484 = vmatprep.subr.bf16.mxu0 %v2831_v58  ;;  %v2936_v55 = vld [vmem:[%s3924_s3 + $0x104] ss:$8 sps:$4 sm:$0xff]   ;;  %v2898_v58 = vld [vmem:[%s3924_s3 + $0xc0] ss:$8 sps:$4 sm:$0xff]  }
  0xad   :  { %1521 = vmatprep.subr.bf16.mxu1 %v2828_v57  ;;  %v2934_v57 = vld [vmem:[%s3924_s3 + $0x100] ss:$8 sps:$4 sm:$0xff]  }
  0xaf   :  { %1485 = vmatpush2.bf16.msra.mxu0 %v2829_v60  ;;  %v2903_v60 = vld [vmem:[%s3924_s3 + $0xb4] ss:$8 sps:$4 sm:$0xff]  }
  0xb0   :  { %1522 = vmatpush2.bf16.msra.mxu1 %v2826_v59  ;;  %1486 = vmatprep.subr.bf16.mxu0 %v2837_v62  ;;  %v2939_v59 = vld [vmem:[%s3924_s3 + $0x1f4] ss:$8 sps:$4 sm:$0xff]   ;;  %v2901_v62 = vld [vmem:[%s3924_s3 + $0xb0] ss:$8 sps:$4 sm:$0xff]  }
  0xb1   :  { %1523 = vmatprep.subr.bf16.mxu1 %v2834_v61  ;;  %v2937_v61 = vld [vmem:[%s3924_s3 + $0x1f0] ss:$8 sps:$4 sm:$0xff]  }
  0xb3   :  { %1487 = vmatpush2.bf16.msra.mxu0 %v2835_v0  ;;  %v2906_v0 = vld [vmem:[%s3924_s3 + $0xa4] ss:$8 sps:$4 sm:$0xff]  }
  0xb4   :  { %1524 = vmatpush2.bf16.msra.mxu1 %v2832_v63  ;;  %1488 = vmatprep.subr.bf16.mxu0 %v2843_v2  ;;  %v2942_v63 = vld [vmem:[%s3924_s3 + $0x1e4] ss:$8 sps:$4 sm:$0xff]   ;;  %v2904_v2 = vld [vmem:[%s3924_s3 + $0xa0] ss:$8 sps:$4 sm:$0xff]  }
  0xb5   :  { %1525 = vmatprep.subr.bf16.mxu1 %v2840_v1  ;;  %v2940_v1 = vld [vmem:[%s3924_s3 + $0x1e0] ss:$8 sps:$4 sm:$0xff]  }
  0xb7   :  { %1489 = vmatpush2.bf16.msra.mxu0 %v2841_v4  ;;  %v2907_v4 = vld [vmem:[%s3924_s3 + $0x90] ss:$8 sps:$4 sm:$0xff]  }
  0xb8   :  { %1526 = vmatpush2.bf16.msra.mxu1 %v2838_v3  ;;  %1490 = vmatprep.subr.bf16.mxu0 %v2849_v8  ;;  %v2909_v3 = vld [vmem:[%s3924_s3 + $0x94] ss:$8 sps:$4 sm:$0xff]   ;;  %v2910_v8 = vld [vmem:[%s3924_s3 + $0x80] ss:$8 sps:$4 sm:$0xff]  }
  0xb9   :  { %1527 = vmatprep.subr.bf16.mxu1 %v2846_v5  ;;  %v2912_v5 = vld [vmem:[%s3924_s3 + $0x84] ss:$8 sps:$4 sm:$0xff]  }
  0xbb   :  { %1491 = vmatpush2.bf16.msra.mxu0 %v2847_v10 }
  0xbc   :  { %1528 = vmatpush2.bf16.msra.mxu1 %v2844_v9  ;;  %1492 = vmatprep.subr.bf16.mxu0 %v2855_v12  ;;  %v2943_v12 = vld [vmem:[%s3924_s3 + $0x1d0] ss:$8 sps:$4 sm:$0xff]  }
  0xbd   :  { %1529 = vmatprep.subr.bf16.mxu1 %v2852_v11  ;;  %v2945_v11 = vld [vmem:[%s3924_s3 + $0x1d4] ss:$8 sps:$4 sm:$0xff]  }
  0xbf   :  { %1493 = vmatpush2.bf16.msra.mxu0 %v2853_v17 }
  0xc0   :  { %1530 = vmatpush2.bf16.msra.mxu1 %v2850_v16  ;;  %1989 = vmatprep.subr.bf16.mxu0 %v2867_v19  ;;  %v2948_v19 = vld [vmem:[%s3924_s3 + $0x1c4] ss:$8 sps:$4 sm:$0xff]  }
  0xc1   :  { %1531 = vmatprep.subr.bf16.mxu1 %v2858_v18  ;;  %v2946_v18 = vld [vmem:[%s3924_s3 + $0x1c0] ss:$8 sps:$4 sm:$0xff]  }
  0xc2   :  { %1495 = vmatmul.mubr.bf16.vlgmr.msra.gmra.mxu0 %v3230_v7  ;;  %v2873_v7 = vld [vmem:[%s3924_s3 + $0x54] ss:$8 sps:$4 sm:$0xff]  }
  0xc3   :  { %1990 = vmatpush1.bf16.msra.mxu0 %v2865_v21 }
  0xc4   :  { %1532 = vmatpush2.bf16.msra.mxu1 %v2856_v20  ;;  %1991 = vmatprep.subr.bf16.mxu0 %v2870_v23 }
  0xc5   :  { %1533 = vmatprep.subr.bf16.mxu1 %v2861_v22 }
  0xc7   :  { %1992 = vmatpush1.bf16.msra.mxu0 %v2868_v25  ;;  %v2951_v25 = vld [vmem:[%s3924_s3 + $0x1b4] ss:$8 sps:$4 sm:$0xff]  }
  0xc8   :  { %1534 = vmatpush2.bf16.msra.mxu1 %v2859_v24  ;;  %1993 = vmatprep.subr.bf16.mxu0 %v2873_v7 }
  0xc9   :  { %1558 = vmatprep.subr.bf16.mxu1 %v2864_v26  ;;  %v2949_v26 = vld [vmem:[%s3924_s3 + $0x1b0] ss:$8 sps:$4 sm:$0xff]  }
  0xcb   :  { %1536 = vmatmul.mubr.bf16.vlgmr.msra.gmra.mxu1 %v3441_v14  ;;  %1994 = vmatpush1.bf16.msra.mxu0 %v2871_v27  ;;  %v2913_v14 = vld [vmem:[%s3924_s3 + $0x170] ss:$8 sps:$4 sm:$0xff]   ;;  %v2954_v27 = vld [vmem:[%s3924_s3 + $0x1a4] ss:$8 sps:$4 sm:$0xff]  }
  0xcc   :  { %1559 = vmatpush1.bf16.msra.mxu1 %v2862_v52  ;;  %1576 = vmatprep.mubr.bf16.mxu1 %v2977_v13  ;;  %v2915_v13 = vld [vmem:[%s3924_s3 + $0x174] ss:$8 sps:$4 sm:$0xff]  }
  0xcd   :  { %1995 = vmatprep.subr.bf16.mxu0 %v2876_v28  ;;  %2030 = vmatprep.subr.bf16.mxu1 %v2915_v13  ;;  %v2952_v28 = vld [vmem:[%s3924_s3 + $0x1a0] ss:$8 sps:$4 sm:$0xff]  }
  0xce   :  { %v2958_v13 = vld [vmem:[%s3924_s3 + $0x180] ss:$8 sps:$4 sm:$0xff]  }
  0xcf   :  { %1996 = vmatpush1.bf16.msra.mxu0 %v2874_v29 }
  0xd0   :  { %1997 = vmatprep.subr.bf16.mxu0 %v2879_v6  ;;  %v2957_v6 = vld [vmem:[%s3924_s3 + $0x194] ss:$8 sps:$4 sm:$0xff]  }
  0xd3   :  { %2459 = vmatmul.mubr.msk.bf16.vlgmr.msra.gmra.mxu1 %vm1253_vm0, %v3256_v15  ;;  %1998 = vmatpush1.bf16.msra.mxu0 %v2877_v30  ;;  %v2885_v15 = vld [vmem:[%s3924_s3 + $0x14] ss:$8 sps:$4 sm:$0xff]   ;;  %v2955_v30 = vld [vmem:[%s3924_s3 + $0x190] ss:$8 sps:$4 sm:$0xff]  }
  0xd4   :  { %2031 = vmatpush1.bf16.msra.mxu1 %v2913_v14  ;;  %1999 = vmatprep.subr.bf16.mxu0 %v2882_v31  ;;  %v2960_v14 = vld [vmem:[%s3924_s3 + $0x184] ss:$8 sps:$4 sm:$0xff]   ;;  %v229_v31 = vlaneseq }
  0xd5   :  { %2032 = vmatprep.subr.bf16.mxu1 %v2918_v32 }
  0xd6   :  { %v3848_v32 = vshrl.u32 %v229_v31, 7  ;;  %v2970_v31 = vld [vmem:[%s3926_s5 + $0x18] sm:$0xff]  }
  0xd7   :  { %2000 = vmatpush1.bf16.msra.mxu0 %v2880_v33  ;;  %v227_v33 = vld [vmem:[%s3925_s2] sm:$0xf] }
  0xd8   :  { %2033 = vmatpush1.bf16.msra.mxu1 %v2916_v34  ;;  %2001 = vmatprep.subr.bf16.mxu0 %v2885_v15  ;;  %v231_v34 = vsub.s32 0, %v3848_v32 }
  0xd9   :  { %2034 = vmatprep.subr.bf16.mxu1 %v2921_v35  ;;  %v235_v35 = vsub.s32 1, %v3848_v32 }
  0xda   :  { %v232_v15 = vrot.slane %v227_v33, %v231_v34 }
  0xdb   :  { %2002 = vmatpush1.bf16.msra.mxu0 %v2883_v37 }
  0xdc   :  { %2035 = vmatpush1.bf16.msra.mxu1 %v2919_v36  ;;  %2003 = vmatprep.subr.bf16.mxu0 %v2888_v39  ;;  %v236_v36 = vrot.slane %v227_v33, %v235_v35 }
  0xdd   :  { %2036 = vmatprep.subr.bf16.mxu1 %v2924_v38 }
  0xdf   :  { %2004 = vmatpush1.bf16.msra.mxu0 %v2886_v41 }
  0xe0   :  { %2037 = vmatpush1.bf16.msra.mxu1 %v2922_v40  ;;  %2005 = vmatprep.subr.bf16.mxu0 %v2891_v43 }
  0xe1   :  { %2038 = vmatprep.subr.bf16.mxu1 %v2927_v42 }
  0xe3   :  { %2006 = vmatpush2.bf16.msra.mxu0 %v2889_v45 }
  0xe4   :  { %2039 = vmatpush1.bf16.msra.mxu1 %v2925_v44  ;;  %2007 = vmatprep.subr.bf16.mxu0 %v2894_v47 }
  0xe5   :  { %2040 = vmatprep.subr.bf16.mxu1 %v2930_v46 }
  0xe7   :  { %2008 = vmatpush2.bf16.msra.mxu0 %v2892_v49 }
  0xe8   :  { %2041 = vmatpush1.bf16.msra.mxu1 %v2928_v48  ;;  %2009 = vmatprep.subr.bf16.mxu0 %v2897_v51 }
  0xe9   :  { %2042 = vmatprep.subr.bf16.mxu1 %v2933_v50 }
  0xeb   :  { %2010 = vmatpush2.bf16.msra.mxu0 %v2895_v54 }
  0xec   :  { %2043 = vmatpush1.bf16.msra.mxu1 %v2931_v53  ;;  %2011 = vmatprep.subr.bf16.mxu0 %v2900_v56 }
  0xed   :  { %2044 = vmatprep.subr.bf16.mxu1 %v2936_v55 }
  0xef   :  { %2012 = vmatpush2.bf16.msra.mxu0 %v2898_v58 }
  0xf0   :  { %2045 = vmatpush1.bf16.msra.mxu1 %v2934_v57  ;;  %2013 = vmatprep.subr.bf16.mxu0 %v2903_v60  ;;  %v239_v60 = vsub.s32 2, %v3848_v32 }
  0xf1   :  { %2046 = vmatprep.subr.bf16.mxu1 %v2939_v59 }
  0xf3   :  { %2014 = vmatpush2.bf16.msra.mxu0 %v2901_v62  ;;  %v243_v62 = vsub.s32 3, %v3848_v32  ;;  %v2524_v32 = vld [vmem:[%s3928_s6] ss:$0 sm:$0xff] }
  0xf4   :  { %2047 = vmatpush2.bf16.msra.mxu1 %v2937_v61  ;;  %2015 = vmatprep.subr.bf16.mxu0 %v2906_v0  ;;  %v240_v0 = vrot.slane %v227_v33, %v239_v60 }
  0xf5   :  { %2048 = vmatprep.subr.bf16.mxu1 %v2942_v63 }
  0xf7   :  { %2016 = vmatpush2.bf16.msra.mxu0 %v2904_v2  ;;  %v244_v2 = vrot.slane %v227_v33, %v243_v62  ;;  %v2971_v33 = vld [vmem:[%s3926_s5 + $0x50] sm:$0xff]  }
  0xf8   :  { %2049 = vmatpush2.bf16.msra.mxu1 %v2940_v1  ;;  %2017 = vmatprep.subr.bf16.mxu0 %v2909_v3 }
  0xf9   :  { %2050 = vmatprep.subr.bf16.mxu1 %v2945_v11 }
  0xfb   :  { %2018 = vmatpush2.bf16.msra.mxu0 %v2907_v4 }
  0xfc   :  { %2019 = vmatprep.subr.bf16.mxu0 %v2912_v5  ;;  %2051 = vmatpush2.bf16.msra.mxu1 %v2943_v12 }
  0xfd   :  { %2052 = vmatprep.subr.bf16.mxu1 %v2948_v19 }
  0xff   :  { %2020 = vmatpush2.bf16.msra.mxu0 %v2910_v8 }
 0x100   :  { %2053 = vmatpush2.bf16.msra.mxu1 %v2946_v18 }
 0x101   :  { %2054 = vmatprep.subr.bf16.mxu1 %v2951_v25 }
 0x102   :  { %v1291_v9 = vpop.f32.mrf.mxu0 }
 0x103   :  { %v1332_v10 = vpop.f32.mrf.mxu1  ;;  %v1292_v37 = vadd.f32 %v1291_v9, %v232_v15  ;;  %v2972_v15 = vld [vmem:[%s3926_s5 + $0x10] sm:$0xff]  }
 0x104   :  { %v1293_v16 = vpop.f32.mrf.mxu0  ;;  %2055 = vmatpush2.bf16.msra.mxu1 %v2949_v26  ;;  %v2963_v26 = vld [vmem:[%s3926_s5 + $0x70] sm:$0xff]  }
 0x105   :  { %v1334_v17 = vpop.f32.mrf.mxu1  ;;  %2056 = vmatprep.subr.bf16.mxu1 %v2954_v27  ;;  %v1294_v38 = vadd.f32 %v1293_v16, %v236_v36  ;;  %v1333_v39 = vadd.f32 %v1332_v10, %v1292_v37  ;;  %v2973_v36 = vld [vmem:[%s3926_s5 + $0x48] sm:$0xff]  }
 0x106   :  { %v1295_v21 = vpop.f32.mrf.mxu0  ;;  %v2974_v37 = vld [vmem:[%s3926_s5 + $0x8] sm:$0xff]  }
 0x107   :  { %v1336_v20 = vpop.f32.mrf.mxu1  ;;  %v1335_v41 = vadd.f32 %v1334_v17, %v1294_v38  ;;  %v2961_v21 = vld [vmem:[%s3926_s5 + $0x78] sm:$0xff]   ;;  %v2975_v38 = vld [vmem:[%s3926_s5 + $0x40] sm:$0xff]  }
 0x108   :  { %v1296_v23 = vpop.f32.mrf.mxu0  ;;  %2057 = vmatpush2.bf16.msra.mxu1 %v2952_v28  ;;  %2541 = vmatprep.subr.bf16.mxu0 %v2961_v21  ;;  %v2965_v28 = vld [vmem:[%s3926_s5 + $0x68] sm:$0xff]  }
 0x109   :  { %v1337_v22 = vpop.f32.mrf.mxu1  ;;  %2058 = vmatprep.subr.bf16.mxu1 %v2957_v6  ;;  %v2966_v6 = vld [vmem:[%s3926_s5 + $0x28] sm:$0xff]  }
 0x10b   :  { %v1414_v24 = vpop.f32.mrf.mxu1 }
 0x10c   :  { %2059 = vmatpush2.bf16.msra.mxu1 %v2955_v30  ;;  %v2967_v30 = vld [vmem:[%s3926_s5 + $0x60] sm:$0xff]  }
 0x10d   :  { %v1416_v7 = vpop.f32.mrf.mxu1  ;;  %2060 = vmatprep.subr.bf16.mxu1 %v2960_v14  ;;  %v2968_v14 = vld [vmem:[%s3926_s5 + $0x20] sm:$0xff]  }
 0x10f   :  { %v1418_v52 = vpop.f32.mrf.mxu1 }
 0x110   :  { %2061 = vmatpush2.bf16.msra.mxu1 %v2958_v13  ;;  %v2964_v52 = vld [vmem:[%s3926_s5 + $0x30] sm:$0xff]   ;;  %v2969_v13 = vld [vmem:[%s3926_s5 + $0x58] sm:$0xff]  }
 0x111   :  { %v1419_v29 = vpop.f32.mrf.mxu1 }
 0x142   :  { %v1373_v40 = vpop.f32.mrf.mxu0 }
 0x143   :  { %v1374_v42 = vadd.f32 %v1373_v40, %v1333_v39  ;;  %v2976_v39 = vld [vmem:[%s3926_s5] sm:$0xff]  }
 0x144   :  { %v1375_v43 = vpop.f32.mrf.mxu0 }
 0x145   :  { %v1415_v44 = vadd.f32 %v1414_v24, %v1374_v42  ;;  %v1376_v45 = vadd.f32 %v1375_v43, %v1335_v41  ;;  %v2962_v24 = vld [vmem:[%s3926_s5 + $0x38] sm:$0xff]  }
 0x146   :  { %v1377_v46 = vpop.f32.mrf.mxu0 }
 0x147   :  { %v1417_v47 = vadd.f32 %v1416_v7, %v1376_v45  ;;  %v1585_v48 = vmax.f32 %v1415_v44, 0.0  ;;  %v1657_v44 = vld [vmem:[%s3927_s4] sm:$0x3] }
 0x148   :  { %v1378_v49 = vpop.f32.mrf.mxu0  ;;  %v1662_v45 = vrot.slane %v1657_v44, %v231_v34  ;;  %v1666_v46 = vrot.slane %v1657_v44, %v235_v35 }
 0x149   :  { %v1586_v50 = vmax.f32 %v1417_v47, 0.0  ;;  %v1589_v54 = vpack.c.bf16 %v1585_v48, %v1585_v48 }
 0x14b   :  { %v1455_v51 = vpop.f32.mrf.mxu1  ;;  %v1590_v53 = vpack.c.bf16 %v1586_v50, %v1586_v50 }
 0x14c   :  { %v1456_v4 = vadd.f32 %v1455_v51, %v240_v0 }
 0x14d   :  { %v1457_v55 = vpop.f32.mrf.mxu1  ;;  %2021 = vmatprep.mubr.bf16.mxu0 %v1590_v53 }
 0x14e   :  { %2022 = vmatmul.mubr.bf16.vlgmr.msra.gmra.mxu0 %v1589_v54  ;;  %v1458_v8 = vadd.f32 %v1457_v55, %v244_v2 }
 0x14f   :  { %v1459_v56 = vpop.f32.mrf.mxu1  ;;  %2542 = vmatpush3.bf16.msra.mxu0 %v2962_v24 }
 0x150   :  { %2543 = vmatprep.subr.bf16.mxu0 %v2963_v26 }
 0x151   :  { %v1460_v57 = vpop.f32.mrf.mxu1 }
 0x153   :  { %2544 = vmatpush3.bf16.msra.mxu0 %v2964_v52 }
 0x154   :  { %2545 = vmatprep.subr.bf16.mxu0 %v2965_v28 }
 0x157   :  { %2546 = vmatpush3.bf16.msra.mxu0 %v2966_v6 }
 0x158   :  { %2547 = vmatprep.subr.bf16.mxu0 %v2967_v30 }
 0x15b   :  { %2548 = vmatpush3.bf16.msra.mxu0 %v2968_v14 }
 0x15c   :  { %2549 = vmatprep.subr.bf16.mxu0 %v2969_v13 }
 0x15f   :  { %2550 = vmatpush3.bf16.msra.mxu0 %v2970_v31 }
 0x160   :  { %2551 = vmatprep.subr.bf16.mxu0 %v2971_v33 }
 0x163   :  { %2552 = vmatpush3.bf16.msra.mxu0 %v2972_v15 }
 0x164   :  { %2553 = vmatprep.subr.bf16.mxu0 %v2973_v36 }
 0x167   :  { %2554 = vmatpush3.bf16.msra.mxu0 %v2974_v37 }
 0x168   :  { %2555 = vmatprep.subr.bf16.mxu0 %v2975_v38 }
 0x16b   :  { %2556 = vmatpush3.bf16.msra.mxu0 %v2976_v39 }
 0x182   :  { %v1496_v58 = vpop.f32.mrf.mxu0 }
 0x183   :  { %v1497_v9 = vadd.f32 %v1496_v58, %v1456_v4 }
 0x184   :  { %v1498_v59 = vpop.f32.mrf.mxu0 }
 0x185   :  { %v1499_v11 = vadd.f32 %v1498_v59, %v1458_v8 }
 0x186   :  { %v1500_v61 = vpop.f32.mrf.mxu0 }
 0x188   :  { %v1501_v63 = vpop.f32.mrf.mxu0 }
 0x18b   :  { %v1537_v1 = vpop.f32.mrf.mxu1 }
 0x18c   :  { %v1538_v12 = vadd.f32 %v1537_v1, %v1497_v9 }
 0x18d   :  { %v1539_v3 = vpop.f32.mrf.mxu1 }
 0x18e   :  { %v1540_v17 = vadd.f32 %v1539_v3, %v1499_v11 }
 0x18f   :  { %v1541_v5 = vpop.f32.mrf.mxu1 }
 0x191   :  { %v1542_v10 = vpop.f32.mrf.mxu1 }
 0x193   :  { %v1578_v16 = vpop.f32.mrf.mxu1 }
 0x194   :  { %v1579_v18 = vadd.f32 %v1578_v16, %v1538_v12 }
 0x195   :  { %v1580_v19 = vpop.f32.mrf.mxu1 }
 0x196   :  { %v1581_v20 = vadd.f32 %v1580_v19, %v1540_v17  ;;  %v1587_v22 = vmax.f32 %v1579_v18, 0.0 }
 0x197   :  { %v1582_v23 = vpop.f32.mrf.mxu1 }
 0x198   :  { %v1588_v25 = vmax.f32 %v1581_v20, 0.0  ;;  %v1591_v29 = vpack.c.bf16 %v1587_v22, %v1587_v22 }
 0x199   :  { %v1583_v7 = vpop.f32.mrf.mxu1 }
 0x19a   :  { %v1592_v27 = vpack.c.bf16 %v1588_v25, %v1588_v25 }
 0x19c   :  { %2062 = vmatprep.mubr.bf16.mxu1 %v1592_v27 }
 0x19d   :  { %2063 = vmatmul.mubr.bf16.vlgmr.msra.gmra.mxu1 %v1591_v29 }
 0x20e   :  { %v2023_v40 = vpop.f32.mrf.mxu0 }
 0x20f   :  { %v2024_v47 = vadd.f32 %v2023_v40, %v1662_v45 }
 0x210   :  { %v2025_v41 = vpop.f32.mrf.mxu0 }
 0x211   :  { %v2026_v49 = vadd.f32 %v2025_v41, %v1666_v46 }
 0x212   :  { %v2027_v42 = vpop.f32.mrf.mxu0 }
 0x214   :  { %v2028_v43 = vpop.f32.mrf.mxu0 }
 0x25d   :  { %v2064_v48 = vpop.f32.mrf.mxu1 }
 0x25e   :  { %v2065_v50 = vadd.f32 %v2064_v48, %v2024_v47 }
 0x25f   :  { %v2066_v51 = vpop.f32.mrf.mxu1 }
 0x260   :  { %v2067_v53 = vadd.f32 %v2066_v51, %v2026_v49  ;;  %v2071_v54 = vmax.f32 %v2065_v50, 0.0 }
 0x261   :  { %v2068_v55 = vpop.f32.mrf.mxu1 }
 0x262   :  { %v2072_v56 = vmax.f32 %v2067_v53, 0.0  ;;  %v2073_v59 = vpack.c.bf16 %v2071_v54, %v2071_v54 }
 0x263   :  { %v2069_v57 = vpop.f32.mrf.mxu1 }
 0x264   :  { %v2074_v58 = vpack.c.bf16 %v2072_v56, %v2072_v56 }
 0x266   :  { %2242 = vmatprep.mubr.bf16.mxu0 %v2074_v58 }
 0x267   :  { %2243 = vmatmul.mubr.bf16.vlgmr.msra.gmra.mxu0 %v2073_v59 }
 0x327   :  { %v2557_v60 = vpop.f32.mrf.mxu0 }
 0x329   :  { %v2558_v34 = vpop.f32.mrf.mxu0 }
 0x32a   :  { %v2559_v35 = vadd.f32 %v2558_v34, %v2557_v60 }
 0x32b   :  { %v2560_v61 = vpop.f32.mrf.mxu0 }
 0x32c   :  { %v2245_v62 = vadd.f32 %v2559_v35, %v2524_v32 }
 0x32d   :  { %v2561_v63 = vpop.f32.mrf.mxu0 }
 0x32e   :  { %2250 = vst [vmem:[%s3929_s7] sm:$0xff] %v2245_v62 }

</bundles_post_ra>
